<compile_context>
chip_gen: v7x
topology: tpu7x:2x2x1
jax: 0.10.0
libtpu: 0.0.40
codegen_flags: <defaults>
</compile_context>

<pallas_src>
from functools import partial

import jax
import jax.numpy as jnp
from jax import lax
from jax.experimental import pallas as pl
from jax.experimental.pallas import tpu as pltpu


def _quantize_kernel(x_ref, ze_ref, wbd_ref, e2_ref, e0_ref,
                     zq_ref, ind_ref, sq_ref, *, groups, n_embed):
    # x_ref  : (tt, D)            token-major z rows of this tile
    # ze_ref : (groups, tt, d_g)  loss-pairing rows (the PyTorch cat-order quirk)
    # wbd_ref: (D, C)             block-diagonal codebook, C = groups*n_embed
    # e2_ref : (1, C)             precomputed ||code||^2 (hoisted out of kernel)
    # e0_ref : (n_embed, d_g)     codebook block 0 (embed_code local-id quirk)
    # zq_ref : (groups, tt, d_g)  out: quantized codes, group-major within tile
    # ind_ref: (1, groups, tt)    out: int32 local code ids, group-major
    # sq_ref : (tt, 1)            out: per-token sum of squared (z_q - z_e)
    tt, D = x_ref.shape
    d_g = D // groups

    # Single lane-dense distance matmul against the block-diagonal codebook.
    # ||x||^2 is constant per (token, group) block so it is dropped from the
    # argmin; no masking needed because off-diagonal blocks are structurally 0.
    xe = jnp.dot(x_ref[...], wbd_ref[...],
                 preferred_element_type=jnp.float32)          # (tt, C)
    dist = e2_ref[...] - 2.0 * xe                             # (tt, C)

    e0 = e0_ref[...]                                          # (n_embed, d_g)
    iota_e = lax.broadcasted_iota(jnp.int32, (tt, n_embed), 1)

    sq_vec = jnp.zeros((tt, d_g), jnp.float32)
    for g in range(groups):                                   # static, small
        # per-group argmin over a contiguous lane slice of dist
        local = jnp.argmin(dist[:, g * n_embed:(g + 1) * n_embed],
                           axis=1).astype(jnp.int32)          # (tt,)
        ind_ref[0, g, :] = local

        # embed_code(): F.embedding(local_ind, embed.weight) -> rows
        # [0, n_embed) of the FULL table for every group (the original quirk).
        onehot = (local[:, None] == iota_e).astype(jnp.float32)       # (tt, E)
        zq_g = jnp.dot(onehot, e0,
                       preferred_element_type=jnp.float32)            # (tt, d_g)
        zq_ref[g, :, :] = zq_g

        # commitment/codebook loss pairing: group-major z_q rows minus the
        # token-major z_e rows at the same flat index, exactly as PyTorch does.
        dg = zq_g - ze_ref[g, :, :]
        sq_vec = sq_vec + dg * dg

    # one cross-lane reduce per tile; per-token partials (padded tail rows are
    # sliced off in the wrapper, so no in-kernel masking is needed).
    sq_ref[...] = jnp.sum(sq_vec, axis=1, keepdims=True)


def _vmem_budget_bytes():
    """Per-generation VMEM budget (v7x: 64 MiB physical, v5e/v6e: 128 MiB)."""
    cap = 128 * 1024 * 1024
    try:
        cap = int(pltpu.get_tpu_info().vmem_capacity_bytes)
    except Exception:
        pass
    return min(cap // 2, 64 * 1024 * 1024)


def _pick_token_tile(T, D, C, budget_bytes):
    """VMEM-driven token-tile size: multiple of 8, cdiv-tiled (padded tail)."""
    # f32 worst-case per-token bytes: double-buffered x/ze/zq blocks (~6*D)
    # plus in-kernel intermediates dist (C), onehot/slices (~C), temporaries.
    per_token = 4 * (9 * D + 2 * C)
    # grid-invariant codebook-side inputs (wbd, e2, e0), double-buffered.
    fixed = 8 * (D * C + C + C * D // max(C, 1))
    avail = max(budget_bytes - fixed, 8 * per_token)
    tt = avail // per_token
    tt = min(tt, 2048)                 # diminishing returns past ~2K rows
    if T >= 16:
        # keep at least two grid steps so both v7x TensorCores get work
        tt = min(tt, -(-T // 2))
    tt = max(8, (min(tt, max(T, 8)) // 8) * 8)
    return int(tt)


def quantize_separate_forward(z, embed_w, *, n_embed, groups,
                              distance_dtype=jnp.float32):
    """Forward pass of Quantize_separate (eval mode). Returns (z_q, diff, ind)."""
    B, N, D = z.shape
    assert D % groups == 0
    d_g = D // groups
    C = groups * n_embed
    T = B * N

    budget = _vmem_budget_bytes()
    tt = _pick_token_tile(T, D, C, budget)
    num_tiles = pl.cdiv(T, tt)
    T_pad = num_tiles * tt

    # Two FREE row-major views of the same z buffer (no transpose copies):
    x2 = z.reshape(T, D)                 # token-major rows  -> distance path
    ze3 = z.reshape(groups, T, d_g)      # cat-order rows    -> loss pairing
    if T_pad != T:                       # zero-padded tail (cdiv tiling)
        x2 = jnp.pad(x2, ((0, T_pad - T), (0, 0)))
        ze3 = jnp.pad(ze3, ((0, 0), (0, T_pad - T), (0, 0)))
    x2 = x2.astype(distance_dtype)

    # Codebook-side constants, hoisted out of the kernel (built once here):
    #   wbd[g*d_g + a, h*n_embed + e] = (g == h) * embed_w[h*n_embed + e, a]
    blocks = embed_w.reshape(groups, n_embed, d_g)            # (G, E, d_g)
    eye_g = jnp.eye(groups, dtype=embed_w.dtype)
    wbd = jnp.einsum('gh,hea->gahe', eye_g, blocks).reshape(D, C)
    wbd = wbd.astype(distance_dtype)
    e2 = jnp.sum(embed_w.astype(jnp.float32) ** 2, axis=1).reshape(1, C)
    e0 = embed_w[:n_embed].astype(jnp.float32)                # gather stays f32

    kernel = partial(_quantize_kernel, groups=groups, n_embed=n_embed)
    zq_gm, ind_tiles, sq_tok = pl.pallas_call(
        kernel,
        out_shape=(
            jax.ShapeDtypeStruct((groups, T_pad, d_g), jnp.float32),
            jax.ShapeDtypeStruct((num_tiles, groups, tt), jnp.int32),
            jax.ShapeDtypeStruct((T_pad, 1), jnp.float32),
        ),
        grid=(num_tiles,),
        in_specs=[
            pl.BlockSpec((tt, D), lambda j: (j, 0)),
            pl.BlockSpec((groups, tt, d_g), lambda j: (0, j, 0)),
            pl.BlockSpec((D, C), lambda j: (0, 0)),
            pl.BlockSpec((1, C), lambda j: (0, 0)),
            pl.BlockSpec((n_embed, d_g), lambda j: (0, 0)),
        ],
        out_specs=(
            pl.BlockSpec((groups, tt, d_g), lambda j: (0, j, 0)),
            pl.BlockSpec((1, groups, tt), lambda j: (j, 0, 0)),
            pl.BlockSpec((tt, 1), lambda j: (j, 0)),
        ),
        compiler_params=pltpu.CompilerParams(
            dimension_semantics=("parallel",),
            vmem_limit_bytes=budget),
    )(x2, ze3, wbd, e2, e0)

    # Straight-through forward value: group-major flat codes reinterpreted
    # row-major into (B, N, D), exactly like the PyTorch reshape chain.
    z_q = (zq_gm[:, :T, :].reshape(groups * T, d_g)
           .reshape(B, N, groups, d_g).reshape(B, N, D))

    # Loss forward value (detach only affects gradients).
    kld_scale = 10.0
    commitment_cost = 0.25
    mean_sq = jnp.sum(sq_tok[:T, 0]) / jnp.float32(groups * T * d_g)
    diff = kld_scale * (commitment_cost * mean_sq + mean_sq)

    # indices: per-tile group-major -> full group-major flat -> (N, B, groups)
    # (the PyTorch reshape/view chain is a row-major reinterpretation).
    ind_gm = (ind_tiles.transpose(1, 0, 2).reshape(groups, T_pad)[:, :T]
              .reshape(groups * T))
    ind = ind_gm.reshape(N, B, groups)
    return z_q, diff, ind


def _reference(z, embed_w, n_embed, groups):
    """Plain-JAX mirror of the PyTorch forward, for validation."""
    B, N, D = z.shape
    d_g = D // groups
    flatten = z.reshape(B * N * groups, d_g)
    dist = (jnp.sum(flatten ** 2, axis=1, keepdims=True)
            - 2.0 * flatten @ embed_w.T
            + jnp.sum(embed_w ** 2, axis=1, keepdims=True).T)
    dist = dist.reshape(B * N, groups, groups, n_embed)
    inds = [jnp.argmax(-dist[:, i, i, :], axis=1) for i in range(groups)]
    ind = jnp.concatenate(inds)
    z_q = embed_w[ind]
    mean_sq = jnp.mean((z_q - flatten) ** 2)
    diff = 10.0 * (0.25 * mean_sq + mean_sq)
    z_q_out = z_q.reshape(B, N, groups, d_g).reshape(B, N, D)
    ind_out = ind.reshape(N, B, groups)
    return z_q_out, diff, ind_out


if __name__ == "__main__":
    key = jax.random.PRNGKey(0)
    k1, k2 = jax.random.split(key)

    B, N, D = 2, 8, 32          # z: (B, N, D)
    groups, n_embed = 4, 16     # codebook: (n_embed*groups, D//groups) = (64, 8)

    z = jax.random.normal(k1, (B, N, D), dtype=jnp.float32)
    embed_w = 0.5 * jax.random.normal(
        k2, (n_embed * groups, D // groups), dtype=jnp.float32)

    z_q, diff, ind = quantize_separate_forward(
        z, embed_w, n_embed=n_embed, groups=groups)
    jax.block_until_ready((z_q, diff, ind))

    # validate against the plain-JAX reference of the PyTorch semantics
    z_q_exp, diff_exp, ind_exp = _reference(z, embed_w, n_embed, groups)
    assert z_q.shape == (B, N, D) and ind.shape == (N, B, groups)
    assert jnp.allclose(z_q, z_q_exp, atol=1e-5, rtol=1e-5)
    assert jnp.allclose(diff, diff_exp, atol=1e-5, rtol=1e-5)
    assert jnp.array_equal(ind, ind_exp.astype(jnp.int32))

    print("KERNEL_OK")
</pallas_src>

<mosaic_0001>
module attributes {stable_mosaic.version = 11 : i64} {
  func.func @_quantize_kernel(%arg0: i32, %arg1: memref<8x32xf32, #tpu.memory_space<vmem>>, %arg2: memref<4x8x8xf32, #tpu.memory_space<vmem>>, %arg3: memref<32x64xf32, #tpu.memory_space<vmem>>, %arg4: memref<1x64xf32, #tpu.memory_space<vmem>>, %arg5: memref<16x8xf32, #tpu.memory_space<vmem>>, %arg6: memref<4x8x8xf32, #tpu.memory_space<vmem>>, %arg7: memref<1x4x8xi32, #tpu.memory_space<vmem>>, %arg8: memref<8x1xf32, #tpu.memory_space<vmem>>) attributes {dimension_semantics = [#tpu.dimension_semantics<parallel>], iteration_bounds = array<i64: 2>, scalar_prefetch = 0 : i64, scratch_operands = 0 : i64, tpu.core_type = #tpu.core_type<tc>, window_params = [{transform_indices = @transform_0, window_bounds = array<i64: 8, 32>}, {transform_indices = @transform_1, window_bounds = array<i64: 4, 8, 8>}, {pipeline_mode = #tpu.pipeline_mode<synchronous>, transform_indices = @transform_2, window_bounds = array<i64: 32, 64>}, {pipeline_mode = #tpu.pipeline_mode<synchronous>, transform_indices = @transform_3, window_bounds = array<i64: 1, 64>}, {pipeline_mode = #tpu.pipeline_mode<synchronous>, transform_indices = @transform_4, window_bounds = array<i64: 16, 8>}, {transform_indices = @transform_5, window_bounds = array<i64: 4, 8, 8>}, {transform_indices = @transform_6, window_bounds = array<i64: 1, 4, 8>}, {transform_indices = @transform_7, window_bounds = array<i64: 8, 1>}]} {
    %c0 = arith.constant 0 : index
    %c0_0 = arith.constant 0 : index
    %0 = vector.load %arg1[%c0, %c0_0] : memref<8x32xf32, #tpu.memory_space<vmem>>, vector<8x32xf32>
    %c0_1 = arith.constant 0 : index
    %c0_2 = arith.constant 0 : index
    %1 = vector.load %arg3[%c0_1, %c0_2] : memref<32x64xf32, #tpu.memory_space<vmem>>, vector<32x64xf32>
    %cst = arith.constant dense<0.000000e+00> : vector<8x64xf32>
    %2 = tpu.matmul %0, %1, %cst {dimension_numbers = #tpu.dot_dimension_numbers<[1], [0], [0], [1], [0, 0, 1, 1], [], []>} : vector<8x32xf32>, vector<32x64xf32>, vector<8x64xf32> -> vector<8x64xf32>
    %c0_3 = arith.constant 0 : index
    %c0_4 = arith.constant 0 : index
    %3 = vector.load %arg4[%c0_3, %c0_4] : memref<1x64xf32, #tpu.memory_space<vmem>>, vector<1x64xf32>
    %cst_5 = arith.constant 2.000000e+00 : f32
    %4 = vector.broadcast %cst_5 : f32 to vector<8x64xf32>
    %5 = arith.mulf %4, %2 : vector<8x64xf32>
    %6 = vector.broadcast %3 : vector<1x64xf32> to vector<8x64xf32>
    %7 = arith.subf %6, %5 : vector<8x64xf32>
    %c0_6 = arith.constant 0 : index
    %c0_7 = arith.constant 0 : index
    %8 = vector.load %arg5[%c0_6, %c0_7] : memref<16x8xf32, #tpu.memory_space<vmem>>, vector<16x8xf32>
    %9 = tpu.iota {dimensions = array<i32: 1>} : vector<8x16xi32>
    %cst_8 = arith.constant 0.000000e+00 : f32
    %10 = vector.broadcast %cst_8 : f32 to vector<8x8xf32>
    %11 = vector.extract_strided_slice %7 {offsets = [0, 0], sizes = [8, 16], strides = [1, 1]} : vector<8x64xf32> to vector<8x16xf32>
    %12 = tpu.reduce_index %11 {axis = 1 : i32, kind = #tpu.reduction_kind<arg_min>} : vector<8x16xf32> -> vector<8xi32>
    %c0_9 = arith.constant 0 : index
    %c0_10 = arith.constant 0 : index
    %c0_11 = arith.constant 0 : index
    %13 = vector.load %arg7[%c0_9, %c0_10, %c0_11] : memref<1x4x8xi32, #tpu.memory_space<vmem>>, vector<1x1x8xi32>
    %14 = vector.shape_cast %13 : vector<1x1x8xi32> to vector<8xi32>
    %15 = vector.shape_cast %12 : vector<8xi32> to vector<1x1x8xi32>
    tpu.vector_store %arg7[%c0_9, %c0_10, %c0_11], %15 {strides = array<i32>} : memref<1x4x8xi32, #tpu.memory_space<vmem>>, vector<1x1x8xi32>,
    %16 = vector.shape_cast %12 : vector<8xi32> to vector<8x1xi32>
    %17 = vector.broadcast %16 : vector<8x1xi32> to vector<8x16xi32>
    %18 = arith.cmpi eq, %17, %9 : vector<8x16xi32>
    %19 = arith.extui %18 : vector<8x16xi1> to vector<8x16xi32>
    %20 = arith.sitofp %19 : vector<8x16xi32> to vector<8x16xf32>
    %cst_12 = arith.constant dense<0.000000e+00> : vector<8x8xf32>
    %21 = tpu.matmul %20, %8, %cst_12 {dimension_numbers = #tpu.dot_dimension_numbers<[1], [0], [0], [1], [0, 0, 1, 1], [], []>} : vector<8x16xf32>, vector<16x8xf32>, vector<8x8xf32> -> vector<8x8xf32>
    %c0_13 = arith.constant 0 : index
    %c0_14 = arith.constant 0 : index
    %c0_15 = arith.constant 0 : index
    %22 = vector.load %arg6[%c0_13, %c0_14, %c0_15] : memref<4x8x8xf32, #tpu.memory_space<vmem>>, vector<1x8x8xf32>
    %23 = vector.shape_cast %22 : vector<1x8x8xf32> to vector<8x8xf32>
    %24 = vector.shape_cast %21 : vector<8x8xf32> to vector<1x8x8xf32>
    tpu.vector_store %arg6[%c0_13, %c0_14, %c0_15], %24 {strides = array<i32>} : memref<4x8x8xf32, #tpu.memory_space<vmem>>, vector<1x8x8xf32>,
    %c0_16 = arith.constant 0 : index
    %c0_17 = arith.constant 0 : index
    %c0_18 = arith.constant 0 : index
    %25 = vector.load %arg2[%c0_16, %c0_17, %c0_18] : memref<4x8x8xf32, #tpu.memory_space<vmem>>, vector<1x8x8xf32>
    %26 = vector.shape_cast %25 : vector<1x8x8xf32> to vector<8x8xf32>
    %27 = arith.subf %21, %26 : vector<8x8xf32>
    %28 = arith.mulf %27, %27 : vector<8x8xf32>
    %29 = arith.addf %10, %28 : vector<8x8xf32>
    %30 = vector.extract_strided_slice %7 {offsets = [0, 16], sizes = [8, 16], strides = [1, 1]} : vector<8x64xf32> to vector<8x16xf32>
    %31 = tpu.reduce_index %30 {axis = 1 : i32, kind = #tpu.reduction_kind<arg_min>} : vector<8x16xf32> -> vector<8xi32>
    %c0_19 = arith.constant 0 : index
    %c1 = arith.constant 1 : index
    %c0_20 = arith.constant 0 : index
    %32 = vector.load %arg7[%c0_19, %c1, %c0_20] : memref<1x4x8xi32, #tpu.memory_space<vmem>>, vector<1x1x8xi32>
    %33 = vector.shape_cast %32 : vector<1x1x8xi32> to vector<8xi32>
    %34 = vector.shape_cast %31 : vector<8xi32> to vector<1x1x8xi32>
    tpu.vector_store %arg7[%c0_19, %c1, %c0_20], %34 {strides = array<i32>} : memref<1x4x8xi32, #tpu.memory_space<vmem>>, vector<1x1x8xi32>,
    %35 = vector.shape_cast %31 : vector<8xi32> to vector<8x1xi32>
    %36 = vector.broadcast %35 : vector<8x1xi32> to vector<8x16xi32>
    %37 = arith.cmpi eq, %36, %9 : vector<8x16xi32>
    %38 = arith.extui %37 : vector<8x16xi1> to vector<8x16xi32>
    %39 = arith.sitofp %38 : vector<8x16xi32> to vector<8x16xf32>
    %cst_21 = arith.constant dense<0.000000e+00> : vector<8x8xf32>
    %40 = tpu.matmul %39, %8, %cst_21 {dimension_numbers = #tpu.dot_dimension_numbers<[1], [0], [0], [1], [0, 0, 1, 1], [], []>} : vector<8x16xf32>, vector<16x8xf32>, vector<8x8xf32> -> vector<8x8xf32>
    %c1_22 = arith.constant 1 : index
    %c0_23 = arith.constant 0 : index
    %c0_24 = arith.constant 0 : index
    %41 = vector.load %arg6[%c1_22, %c0_23, %c0_24] : memref<4x8x8xf32, #tpu.memory_space<vmem>>, vector<1x8x8xf32>
    %42 = vector.shape_cast %41 : vector<1x8x8xf32> to vector<8x8xf32>
    %43 = vector.shape_cast %40 : vector<8x8xf32> to vector<1x8x8xf32>
    tpu.vector_store %arg6[%c1_22, %c0_23, %c0_24], %43 {strides = array<i32>} : memref<4x8x8xf32, #tpu.memory_space<vmem>>, vector<1x8x8xf32>,
    %c1_25 = arith.constant 1 : index
    %c0_26 = arith.constant 0 : index
    %c0_27 = arith.constant 0 : index
    %44 = vector.load %arg2[%c1_25, %c0_26, %c0_27] : memref<4x8x8xf32, #tpu.memory_space<vmem>>, vector<1x8x8xf32>
    %45 = vector.shape_cast %44 : vector<1x8x8xf32> to vector<8x8xf32>
    %46 = arith.subf %40, %45 : vector<8x8xf32>
    %47 = arith.mulf %46, %46 : vector<8x8xf32>
    %48 = arith.addf %29, %47 : vector<8x8xf32>
    %49 = vector.extract_strided_slice %7 {offsets = [0, 32], sizes = [8, 16], strides = [1, 1]} : vector<8x64xf32> to vector<8x16xf32>
    %50 = tpu.reduce_index %49 {axis = 1 : i32, kind = #tpu.reduction_kind<arg_min>} : vector<8x16xf32> -> vector<8xi32>
    %c0_28 = arith.constant 0 : index
    %c2 = arith.constant 2 : index
    %c0_29 = arith.constant 0 : index
    %51 = vector.load %arg7[%c0_28, %c2, %c0_29] : memref<1x4x8xi32, #tpu.memory_space<vmem>>, vector<1x1x8xi32>
    %52 = vector.shape_cast %51 : vector<1x1x8xi32> to vector<8xi32>
    %53 = vector.shape_cast %50 : vector<8xi32> to vector<1x1x8xi32>
    tpu.vector_store %arg7[%c0_28, %c2, %c0_29], %53 {strides = array<i32>} : memref<1x4x8xi32, #tpu.memory_space<vmem>>, vector<1x1x8xi32>,
    %54 = vector.shape_cast %50 : vector<8xi32> to vector<8x1xi32>
    %55 = vector.broadcast %54 : vector<8x1xi32> to vector<8x16xi32>
    %56 = arith.cmpi eq, %55, %9 : vector<8x16xi32>
    %57 = arith.extui %56 : vector<8x16xi1> to vector<8x16xi32>
    %58 = arith.sitofp %57 : vector<8x16xi32> to vector<8x16xf32>
    %cst_30 = arith.constant dense<0.000000e+00> : vector<8x8xf32>
    %59 = tpu.matmul %58, %8, %cst_30 {dimension_numbers = #tpu.dot_dimension_numbers<[1], [0], [0], [1], [0, 0, 1, 1], [], []>} : vector<8x16xf32>, vector<16x8xf32>, vector<8x8xf32> -> vector<8x8xf32>
    %c2_31 = arith.constant 2 : index
    %c0_32 = arith.constant 0 : index
    %c0_33 = arith.constant 0 : index
    %60 = vector.load %arg6[%c2_31, %c0_32, %c0_33] : memref<4x8x8xf32, #tpu.memory_space<vmem>>, vector<1x8x8xf32>
    %61 = vector.shape_cast %60 : vector<1x8x8xf32> to vector<8x8xf32>
    %62 = vector.shape_cast %59 : vector<8x8xf32> to vector<1x8x8xf32>
    tpu.vector_store %arg6[%c2_31, %c0_32, %c0_33], %62 {strides = array<i32>} : memref<4x8x8xf32, #tpu.memory_space<vmem>>, vector<1x8x8xf32>,
    %c2_34 = arith.constant 2 : index
    %c0_35 = arith.constant 0 : index
    %c0_36 = arith.constant 0 : index
    %63 = vector.load %arg2[%c2_34, %c0_35, %c0_36] : memref<4x8x8xf32, #tpu.memory_space<vmem>>, vector<1x8x8xf32>
    %64 = vector.shape_cast %63 : vector<1x8x8xf32> to vector<8x8xf32>
    %65 = arith.subf %59, %64 : vector<8x8xf32>
    %66 = arith.mulf %65, %65 : vector<8x8xf32>
    %67 = arith.addf %48, %66 : vector<8x8xf32>
    %68 = vector.extract_strided_slice %7 {offsets = [0, 48], sizes = [8, 16], strides = [1, 1]} : vector<8x64xf32> to vector<8x16xf32>
    %69 = tpu.reduce_index %68 {axis = 1 : i32, kind = #tpu.reduction_kind<arg_min>} : vector<8x16xf32> -> vector<8xi32>
    %c0_37 = arith.constant 0 : index
    %c3 = arith.constant 3 : index
    %c0_38 = arith.constant 0 : index
    %70 = vector.load %arg7[%c0_37, %c3, %c0_38] : memref<1x4x8xi32, #tpu.memory_space<vmem>>, vector<1x1x8xi32>
    %71 = vector.shape_cast %70 : vector<1x1x8xi32> to vector<8xi32>
    %72 = vector.shape_cast %69 : vector<8xi32> to vector<1x1x8xi32>
    tpu.vector_store %arg7[%c0_37, %c3, %c0_38], %72 {strides = array<i32>} : memref<1x4x8xi32, #tpu.memory_space<vmem>>, vector<1x1x8xi32>,
    %73 = vector.shape_cast %69 : vector<8xi32> to vector<8x1xi32>
    %74 = vector.broadcast %73 : vector<8x1xi32> to vector<8x16xi32>
    %75 = arith.cmpi eq, %74, %9 : vector<8x16xi32>
    %76 = arith.extui %75 : vector<8x16xi1> to vector<8x16xi32>
    %77 = arith.sitofp %76 : vector<8x16xi32> to vector<8x16xf32>
    %cst_39 = arith.constant dense<0.000000e+00> : vector<8x8xf32>
    %78 = tpu.matmul %77, %8, %cst_39 {dimension_numbers = #tpu.dot_dimension_numbers<[1], [0], [0], [1], [0, 0, 1, 1], [], []>} : vector<8x16xf32>, vector<16x8xf32>, vector<8x8xf32> -> vector<8x8xf32>
    %c3_40 = arith.constant 3 : index
    %c0_41 = arith.constant 0 : index
    %c0_42 = arith.constant 0 : index
    %79 = vector.load %arg6[%c3_40, %c0_41, %c0_42] : memref<4x8x8xf32, #tpu.memory_space<vmem>>, vector<1x8x8xf32>
    %80 = vector.shape_cast %79 : vector<1x8x8xf32> to vector<8x8xf32>
    %81 = vector.shape_cast %78 : vector<8x8xf32> to vector<1x8x8xf32>
    tpu.vector_store %arg6[%c3_40, %c0_41, %c0_42], %81 {strides = array<i32>} : memref<4x8x8xf32, #tpu.memory_space<vmem>>, vector<1x8x8xf32>,
    %c3_43 = arith.constant 3 : index
    %c0_44 = arith.constant 0 : index
    %c0_45 = arith.constant 0 : index
    %82 = vector.load %arg2[%c3_43, %c0_44, %c0_45] : memref<4x8x8xf32, #tpu.memory_space<vmem>>, vector<1x8x8xf32>
    %83 = vector.shape_cast %82 : vector<1x8x8xf32> to vector<8x8xf32>
    %84 = arith.subf %78, %83 : vector<8x8xf32>
    %85 = arith.mulf %84, %84 : vector<8x8xf32>
    %86 = arith.addf %67, %85 : vector<8x8xf32>
    %cst_46 = arith.constant dense<0.000000e+00> : vector<8xf32>
    %87 = vector.multi_reduction <add>, %86, %cst_46 [1] : vector<8x8xf32> to vector<8xf32>
    %88 = vector.shape_cast %87 : vector<8xf32> to vector<8x1xf32>
    %c0_47 = arith.constant 0 : index
    %c0_48 = arith.constant 0 : index
    %89 = vector.load %arg8[%c0_47, %c0_48] : memref<8x1xf32, #tpu.memory_space<vmem>>, vector<8x1xf32>
    tpu.vector_store %arg8[%c0_47, %c0_48], %88 {strides = array<i32>} : memref<8x1xf32, #tpu.memory_space<vmem>>, vector<8x1xf32>,
    return
  }
  func.func @transform_0(%arg0: i32) -> (i32, i32) {
    %c0_i32 = arith.constant 0 : i32
    %c0_i32_0 = arith.constant 0 : i32
    return %arg0, %c0_i32 : i32, i32
  }
  func.func @transform_1(%arg0: i32) -> (i32, i32, i32) {
    %c0_i32 = arith.constant 0 : i32
    %c0_i32_0 = arith.constant 0 : i32
    %c0_i32_1 = arith.constant 0 : i32
    return %c0_i32, %arg0, %c0_i32_0 : i32, i32, i32
  }
  func.func @transform_2(%arg0: i32) -> (i32, i32) {
    %c0_i32 = arith.constant 0 : i32
    %c0_i32_0 = arith.constant 0 : i32
    %c0_i32_1 = arith.constant 0 : i32
    return %c0_i32, %c0_i32_0 : i32, i32
  }
  func.func @transform_3(%arg0: i32) -> (i32, i32) {
    %c0_i32 = arith.constant 0 : i32
    %c0_i32_0 = arith.constant 0 : i32
    %c0_i32_1 = arith.constant 0 : i32
    return %c0_i32, %c0_i32_0 : i32, i32
  }
  func.func @transform_4(%arg0: i32) -> (i32, i32) {
    %c0_i32 = arith.constant 0 : i32
    %c0_i32_0 = arith.constant 0 : i32
    %c0_i32_1 = arith.constant 0 : i32
    return %c0_i32, %c0_i32_0 : i32, i32
  }
  func.func @transform_5(%arg0: i32) -> (i32, i32, i32) {
    %c0_i32 = arith.constant 0 : i32
    %c0_i32_0 = arith.constant 0 : i32
    %c0_i32_1 = arith.constant 0 : i32
    return %c0_i32, %arg0, %c0_i32_0 : i32, i32, i32
  }
  func.func @transform_6(%arg0: i32) -> (i32, i32, i32) {
    %c0_i32 = arith.constant 0 : i32
    %c0_i32_0 = arith.constant 0 : i32
    %c0_i32_1 = arith.constant 0 : i32
    return %arg0, %c0_i32, %c0_i32_0 : i32, i32, i32
  }
  func.func @transform_7(%arg0: i32) -> (i32, i32) {
    %c0_i32 = arith.constant 0 : i32
    %c0_i32_0 = arith.constant 0 : i32
    return %arg0, %c0_i32 : i32, i32
  }
}

</mosaic_0001>

<bundles_post_ra>
// kernel: tpu_custom_call.1
= control target key start
LH: loop header
LB: loop body
LE: loop exit
PB: predicated region body
PF: predicated region fallthrough
CT: control target
= control target key end

     0   :  { %s2112_s0 = inlined_call_operand.hbm [shape: f32[16,32], index: 0, kind: input, shape index: {}]   ;;  %s2113_s1 = inlined_call_operand.hbm [shape: f32[4,16,8], index: 1, kind: input, shape index: {}]   ;;  %s2114_s2 = inlined_call_operand.hbm [shape: f32[32,64], index: 2, kind: input, shape index: {}]   ;;  %s2115_s3 = inlined_call_operand.hbm [shape: f32[1,64], index: 3, kind: input, shape index: {}]   ;;  %s2116_s4 = inlined_call_operand.hbm [shape: f32[16,8], index: 4, kind: input, shape index: {}]   ;;  %s2117_s5 = inlined_call_operand.hbm [shape: f32[4,16,8], index: 5, kind: output, shape index: {0}]   ;;  %s2118_s6 = inlined_call_operand.hbm [shape: s32[2,4,8], index: 6, kind: output, shape index: {1}]   ;;  %s2119_s7 = inlined_call_operand.hbm [shape: f32[16,1], index: 7, kind: output, shape index: {2}]  }
   0x1   :  { %2127 = sst [smem:[#allocation22_spill]] %s2112_s0 }
   0x2   :  { %2128 = sst [smem:[#allocation23_spill]] %s2114_s2 }
   0x3   :  { %13 = vsyncpa [#allocation3], 0 }
   0x4   :  { %15 = vsyncpa [#allocation3 + $0x1], 0 }
   0x5   :  { %16 = vsyncpa [#allocation6], 0 }
   0x6   :  { %18 = vsyncpa [#allocation6 + $0x1], 0 }
   0x7   :  { %19 = vsyncpa [#allocation9], 0 }
   0x8   :  { %20 = vsyncpa [#allocation4], 0 }
   0x9   :  { %22 = vsyncpa [#allocation4 + $0x1], 0 }
   0xa   :  { %23 = vsyncpa [#allocation13], 0 }
   0xb   :  { %25 = vsyncpa [#allocation13 + $0x1], 0  ;;  %s1663_s24 = smov 0   ;;  %s1665_s25 = smov 0  }
   0xc   :  { %s1667_s26 = smov 0   ;;  %s1669_s27 = smov 0  }
   0xd LB: > { %s1684_s28 = sadd.s32 4294967295, %s1601_s27   ;;  %s2121_s29 = sadd.s32 4294967294, %s1601_s27   ;;  %s1601_s27 = sphi %s1669_s27, %s2156_s27   ;;  %s1597_s26 = sphi %s1667_s26, %s2155_s26   ;;  %s1593_s25 = sphi %s1665_s25, %s2154_s25   ;;  %s1589_s24 = sphi %s1663_s24, %s2153_s24  }
   0xe   : > { %p51_p0 = scmp.ne.s32.totalorder %s1593_s25, %s1589_s24  ;;  %p2120_p1 = scmp.eq.s32.totalorder %s1684_s28, 0 }
   0xf   : > { %p170_p3 = scmp.eq.s32.totalorder %s2121_s29, 1  ;;  %p1099_p5 = scmp.ge.s32.totalorder %s1601_s27, 1 }
  0x10   : > { %p1695_p4 = por %p2120_p1, %p51_p0  ;;  %p229_p7 = scmp.lt.s32.totalorder %s1601_s27, 3 }
  0x11   : > { %p1700_p6 = por %p170_p3, %p51_p0  ;;  %s1603_s10 = smov [#allocation7]  }
  0x12   : > { %s2129_s30 = scalar_select %p1695_p4, 1, 0 }
  0x13   : > { %s2130_s8 = scalar_select %p1700_p6, 1, 0 }
  0x14   : > { %p1705_p8 = pnand %p1099_p5, %p229_p7  ;;  %s241_s11 = sshll.u32 %s1603_s10, 4  ;;  %s1709_s11 = int_to_ptr.vmem [resolvable:$true] %s241_s11 }
  0x15   : > { %2131 = sst [smem:[#allocation21_spill]] %s2130_s8  ;;  %s1604_s13 = smov [#allocation8]  }
  0x16   : > { %s2132_s9 = scalar_select %p1705_p8, 1, 0 }
  0x17   : > { %p1237_p9 = pneg %p1705_p8  ;;  %s255_s14 = sshll.u32 %s1604_s13, 4  ;;  %s1720_s14 = int_to_ptr.vmem [resolvable:$true] %s255_s14 }
  0x18   : > { %s1605_s15 = smov [#allocation10]   ;;  %s2134_s2 = sld [smem:[#allocation23_spill]] }
  0x19   : > { %p1716_p11 = pnand %p1237_p9, %p2120_p1  ;;  %s1722_s16 = sshll.u32 %s1605_s15, 4  ;;  %s266_s16 = int_to_ptr.vmem [resolvable:$true] %s1722_s16 }
  0x1b   : > { %p1732_p13 = pneg %p1716_p11 }
  0x1e   : > { %s1319_s19 = scalar_lea.hbm %s2134_s2, 512 }
  0x1f   : > { %p1320_p12 = scmp.ne.s32.totalorder %s2134_s2, %s1319_s19  ;;  %p1326_p5 = scmp.lt.u32.totalorder %s1319_s19, %s2134_s2 }
  0x21   : > { %p1322_p0 = pnand %p1732_p13, %p1320_p12 }
  0x23   : > { %p1323_p3 = pneg %p1322_p0 }
  0x25   : > { %p1328_p7 = pnand %p1326_p5, %p1323_p3 }
  0x27   : > { %1331 = shalt.err (!%p1328_p7)
}
  0x28   : > { %s1332_s13 = scalar_lea.vmem %s1709_s11, 512  ;;  %p1340_p2 = scmp.lt.s32.totalorder %s1709_s11, %s1709_s11 }
  0x29   : > { %p1333_p9 = scmp.ne.s32.totalorder %s1709_s11, %s1332_s13  ;;  %p1341_p6 = scmp.lt.s32.totalorder %s1332_s13, %s1332_s13 }
  0x2b   : > { %p1335_p10 = pnand %p1333_p9, %p1732_p13  ;;  %p1342_p12 = por %p1341_p6, %p1340_p2 }
  0x2d   : > { %p1336_p1 = pneg %p1335_p10 }
  0x2f   : > { %p1343_p0 = pnand %p1342_p12, %p1336_p1 }
  0x31   : > { %1346 = shalt.err (!%p1343_p0)
}
  0x32   : > { %s2125_s15 = smov 128   ;;  %s2126_s17 = smov 8  }
  0x33   : > { %1240 = dma.hbm_to_vmem [thread:$0]  (!%p1716_p11), %s2134_s2, 512, %s1709_s11, [#allocation6], %s2125_s15, %s2125_s15, %s2126_s17  }
  0x34   : > { %s1347_s23 = scalar_lea.hbm %s2115_s3, 16 }
  0x35   : > { %p1348_p1 = scmp.ne.s32.totalorder %s2115_s3, %s1347_s23  ;;  %p1354_p10 = scmp.lt.u32.totalorder %s1347_s23, %s2115_s3 }
  0x37   : > { %p1350_p2 = pnand %p1348_p1, %p1732_p13 }
  0x39   : > { %p1351_p6 = pneg %p1350_p2 }
  0x3b   : > { %p1356_p3 = pnand %p1354_p10, %p1351_p6 }
  0x3d   : > { %1359 = shalt.err (!%p1356_p3)
}
  0x3e   : > { %s1360_s11 = scalar_lea.vmem %s1720_s14, 16  ;;  %s1367_s18 = scalar_lea.vmem %s1720_s14, 32 }
  0x3f   : > { %p1361_p5 = scmp.ne.s32.totalorder %s1720_s14, %s1360_s11  ;;  %p1368_p12 = scmp.lt.s32.totalorder %s1720_s14, %s1720_s14 }
  0x40   : > { %p1369_p0 = scmp.lt.s32.totalorder %s1367_s18, %s1360_s11 }
  0x41   : > { %p1363_p7 = pnand %p1361_p5, %p1732_p13 }
  0x42   : > { %p1370_p1 = por %p1369_p0, %p1368_p12 }
  0x43   : > { %p1364_p9 = pneg %p1363_p7 }
  0x45   : > { %p1371_p2 = pnand %p1370_p1, %p1364_p9 }
  0x47   : > { %1374 = shalt.err (!%p1371_p2)
}
  0x48   : > { %1243 = dma.hbm_to_vmem [thread:$0]  (!%p1716_p11), %s2115_s3, 16, %s1720_s14, [#allocation9]  }
  0x49   : > { %s1375_s21 = scalar_lea.hbm %s2116_s4, 256 }
  0x4a   : > { %p1376_p6 = scmp.ne.s32.totalorder %s2116_s4, %s1375_s21  ;;  %p1382_p5 = scmp.lt.u32.totalorder %s1375_s21, %s2116_s4 }
  0x4c   : > { %p1378_p10 = pnand %p1376_p6, %p1732_p13 }
  0x4e   : > { %p1379_p3 = pneg %p1378_p10 }
  0x50   : > { %p1384_p7 = pnand %p1382_p5, %p1379_p3 }
  0x52   : > { %1387 = shalt.err (!%p1384_p7)
}
  0x53   : > { %s1388_s18 = scalar_lea.vmem %s266_s16, 256  ;;  %p1396_p1 = scmp.lt.s32.totalorder %s266_s16, %s266_s16 }
  0x54   : > { %p1389_p9 = scmp.ne.s32.totalorder %s266_s16, %s1388_s18  ;;  %p1397_p2 = scmp.lt.s32.totalorder %s1388_s18, %s1388_s18 }
  0x56   : > { %p1391_p12 = pnand %p1389_p9, %p1732_p13  ;;  %p1398_p4 = por %p1397_p2, %p1396_p1 }
  0x58   : > { %p1392_p0 = pneg %p1391_p12 }
  0x5a   : > { %p1399_p8 = pnand %p1398_p4, %p1392_p0 }
  0x5c   : > { %1402 = shalt.err (!%p1399_p8)
}
  0x5d   : > { %1246 = dma.hbm_to_vmem [thread:$0]  (!%p1716_p11), %s2116_s4, 256, %s266_s16, [#allocation9], %s2125_s15, %s2125_s15, %s2126_s17  }
  0x5e   : > { %s1803_s12 = sadd.s32 1, %s1601_s27   ;;  %s38_s8 = sadd.s32 1, %s1597_s26 }
  0x5f   : > { %s35_s22 = ssub.s32 %s1601_s27, %s1803_s12  ;;  %p45_p8 = scmp.ne.s32.totalorder %s1597_s26, %s1593_s25 }
  0x60   : > { %p36_p4 = scmp.eq.s32.totalorder %s35_s22, 0  ;;  %p46_p13 = scmp.eq.s32.totalorder %s1601_s27, 0 }
  0x61   : > { %p1267_p6 = scmp.lt.s32.totalorder %s1601_s27, 2  ;;  %p2136_p3 = scmp.eq.s32.totalorder %s1684_s28, 1 }
  0x62   : > { %s1813_s19 = scalar_select %p36_p4, %s1597_s26, %s38_s8  }
  0x63   : > { %p47_p10 = por %p46_p13, %p45_p8  ;;  %p1817_p5 = por %p2136_p3, %p45_p8 }
  0x64   : > { %s1822_s21 = sand.u32 1, %s1597_s26   ;;  %s1105_s16 = sshll.u32 %s1601_s27, 7 }
  0x65   : > { %s1104_s23 = sshll.u32 %s1822_s21, 3  ;;  %s2138_s0 = sld [smem:[#allocation22_spill]] }
  0x66   : > { %s283_s18 = scalar_lea.vmem [#allocation2], %s1104_s23  ;;  %p1833_p11 = pnand %p1267_p6, %p47_p10 }
  0x67   : > { %s290_s14 = sshll.u32 %s283_s18, 4  ;;  %s280_s8 = scalar_lea.sflag [#allocation3], %s1822_s21  ;;  %s1837_s14 = int_to_ptr.vmem [resolvable:$true] %s290_s14 }
  0x68   : > { %p1405_p9 = pneg %p1833_p11 }
  0x6b   : > { %s1831_s11 = scalar_lea.hbm %s2138_s0, %s1105_s16  ;;  %s1408_s13 = scalar_lea.hbm %s2138_s0, 256 }
  0x6c   : > { %s1403_s15 = scalar_lea.hbm %s1831_s11, 128  ;;  %p1409_p1 = scmp.lt.u32.totalorder %s1831_s11, %s2138_s0 }
  0x6d   : > { %p1404_p7 = scmp.ne.s32.totalorder %s1831_s11, %s1403_s15  ;;  %p1410_p2 = scmp.lt.u32.totalorder %s1408_s13, %s1403_s15 }
  0x6e   : > { %p1412_p8 = scmp.lt.u32.totalorder %s1403_s15, %s1831_s11 }
  0x6f   : > { %p1406_p12 = pnand %p1405_p9, %p1404_p7  ;;  %p1411_p4 = por %p1410_p2, %p1409_p1 }
  0x71   : > { %p1407_p0 = pneg %p1406_p12  ;;  %p1413_p13 = por %p1412_p8, %p1411_p4 }
  0x73   : > { %p1414_p6 = pnand %p1413_p13, %p1407_p0 }
  0x75   : > { %1417 = shalt.err (!%p1414_p6)
}
  0x76   : > { %s1418_s22 = scalar_lea.vmem %s1837_s14, 128  ;;  %s1608_s23 = smov [#allocation2]  }
  0x77   : > { %p1419_p10 = scmp.ne.s32.totalorder %s1837_s14, %s1418_s22  ;;  %s1423_s10 = sshll.u32 %s1608_s23, 4  ;;  %s1424_s10 = int_to_ptr.vmem [resolvable:$false] %s1423_s10 }
  0x78   : > { %s1425_s17 = scalar_lea.vmem %s1424_s10, 256  ;;  %p1426_p12 = scmp.lt.s32.totalorder %s1837_s14, %s1424_s10 }
  0x79   : > { %p1421_p3 = pnand %p1419_p10, %p1405_p9  ;;  %p1427_p1 = scmp.lt.s32.totalorder %s1425_s17, %s1418_s22 }
  0x7b   : > { %p1422_p7 = pneg %p1421_p3  ;;  %p1428_p2 = por %p1427_p1, %p1426_p12 }
  0x7d   : > { %p1429_p4 = pnand %p1428_p2, %p1422_p7 }
  0x7f   : > { %1432 = shalt.err (!%p1429_p4)
}
  0x80   : > { %1250 = dma.hbm_to_vmem [thread:$0]  (!%p1833_p11), %s1831_s11, 128, %s1837_s14, %s280_s8  }
  0x81   : > { %s1871_s18 = scalar_lea.hbm %s2113_s1, %s1105_s16  ;;  %s2140_s23 = sshll.u32 %s1822_s21, 5 }
  0x82   : > { %s301_s22 = scalar_lea.vmem [#allocation5], %s2140_s23  ;;  %s297_s17 = sand.u32 1, %s1601_s27  }
  0x83   : > { %s307_s10 = sshll.u32 %s301_s22, 4  ;;  %s1878_s0 = scalar_lea.sflag [#allocation6], %s297_s17  ;;  %s1875_s10 = int_to_ptr.vmem [resolvable:$true] %s307_s10 }
  0x84   : > { %s1433_s2 = scalar_lea.hbm %s1871_s18, 512  ;;  %s1438_s21 = scalar_lea.hbm %s2113_s1, 1024 }
  0x85   : > { %p1434_p0 = scmp.ne.s32.totalorder %s1871_s18, %s1433_s2  ;;  %p1439_p6 = scmp.lt.u32.totalorder %s1871_s18, %s2113_s1 }
  0x86   : > { %p1440_p10 = scmp.lt.u32.totalorder %s1438_s21, %s1433_s2  ;;  %p1442_p7 = scmp.lt.u32.totalorder %s1433_s2, %s1871_s18 }
  0x87   : > { %p1436_p8 = pnand %p1434_p0, %p1405_p9 }
  0x88   : > { %p1441_p3 = por %p1440_p10, %p1439_p6 }
  0x89   : > { %p1437_p13 = pneg %p1436_p8 }
  0x8a   : > { %p1443_p12 = por %p1442_p7, %p1441_p3 }
  0x8c   : > { %p1444_p1 = pnand %p1443_p12, %p1437_p13 }
  0x8e   : > { %1447 = shalt.err (!%p1444_p1)
}
  0x8f   : > { %s1448_s15 = scalar_lea.vmem %s1875_s10, 512  ;;  %s1609_s13 = smov [#allocation5]  }
  0x90   : > { %p1449_p2 = scmp.ne.s32.totalorder %s1875_s10, %s1448_s15  ;;  %s1453_s23 = sshll.u32 %s1609_s13, 4  ;;  %s1454_s23 = int_to_ptr.vmem [resolvable:$false] %s1453_s23 }
  0x91   : > { %s1455_s22 = scalar_lea.vmem %s1454_s23, 1024  ;;  %p1456_p8 = scmp.lt.s32.totalorder %s1875_s10, %s1454_s23 }
  0x92   : > { %p1451_p4 = pnand %p1449_p2, %p1405_p9  ;;  %p1457_p6 = scmp.lt.s32.totalorder %s1455_s22, %s1448_s15 }
  0x94   : > { %p1452_p0 = pneg %p1451_p4  ;;  %p1458_p10 = por %p1457_p6, %p1456_p8 }
  0x96   : > { %p1459_p3 = pnand %p1458_p10, %p1452_p0 }
  0x98   : > { %1462 = shalt.err (!%p1459_p3)
}
  0x99   : > { %s1610_s2 = smov 256   ;;  %s2141_s17 = smov 8  }
  0x9a   : > { %s2142_s16 = smov 128   ;;  %p2143_p9 = scmp.ne.s32.totalorder %s2132_s9, 0 }
  0x9b   : > { %1253 = dma.hbm_to_vmem [thread:$0]  (!%p1833_p11), %s1871_s18, 512, %s1875_s10, %s1878_s0, %s1610_s2, %s2142_s16, %s2141_s17  }
  0x9c   : > { %319 = sbr.rel (%p2143_p9) target bundleno = 1042 (0x412), region = 40  ;;  %s1909_s11 = sand.u32 (!%p2143_p9), 1, %s1593_s25  }
  0x9d   : > { %s1109_s21 = sshll.u32 (!%p2143_p9), %s1909_s11, 3  ;;  %s322_s14 = scalar_lea.sflag (!%p2143_p9), [#allocation3], %s1909_s11 }
  0x9e   : > { %s325_s29 = scalar_lea.vmem (!%p2143_p9), [#allocation2], %s1109_s21  ;;  %p2144_p13 = scmp.ne.s32.totalorder (!%p2143_p9), %s2129_s30, 0 }
  0xa3   : > { %1564 = dma.done.wait (%p2144_p13), %s322_s14, 128  }
  0xa4   : > { %1566 = vsyncadd (%p2144_p13), %s322_s14, 4294967168  ;;  %s330_s0 = sand.u32 1, %s1684_s28   ;;  %s1110_s9 = sshll.u32 %s1909_s11, 5 }
  0xa5   : > { %s331_s18 = scalar_lea.sflag [#allocation6], %s330_s0  ;;  %s1925_s10 = scalar_lea.vmem [#allocation5], %s1110_s9 }
  0xa6   : > { %1568 = dma.done.wait (%p2144_p13), %s331_s18, 512  }
  0xa7   : > { %1570 = vsyncadd (%p2144_p13), %s331_s18, 4294966784  ;;  %p2145_p11 = scmp.eq.s32.totalorder %s1684_s28, 0 }
  0xa9   : > { %1572 = dma.done.wait (%p2145_p11), [#allocation6], 512   ;;  %p2146_p7 = pmov %p2145_p11 }
  0xab   : > { %1574 = vsyncadd (%p2146_p7), [#allocation6], 4294966784  ;;  %p2147_p12 = pmov %p2146_p7 }
  0xac   : > { %p2148_p1 = pmov %p2146_p7 }
  0xad   : > { %1576 = dma.done.wait (%p2147_p12), [#allocation9], 272  }
  0xae   : > { %1578 = vsyncadd (%p2148_p1), [#allocation9], 4294967024  ;;  %v1611_v0 = vmov 0.0|0.0   ;;  %vm1612_vm0 = vmmov 0   ;;  %v1613_v1 = vmov 0.0   ;;  %v393_v2 = vld [vmem:[#allocation7] sm:$0xff]  ;;  %v482_v24 = vlaneseq }
  0xaf   : > { %1197 = vmatprep.subr.bf16.mxu0 %v1611_v0  ;;  %1166 = vmatprep.mubr.msk.f32.mxu0 %vm1612_vm0, %v1613_v1  ;;  %v394_v3 = vld [vmem:[#allocation7 + $0x8] sm:$0xff]  ;;  %v395_v4 = vld [vmem:[#allocation7 + $0x10] sm:$0xff]  ;;  %v396_v6 = vld [vmem:[#allocation7 + $0x18] sm:$0xff]  ;;  %vm397_vm1 = vcmask 261120   ;;  %s1614_s30 = smov 80   ;;  %s1615_s8 = smov 112  }
  0xb0   : > { %1203 = vmatprep.subr.bf16.mxu1 %v1611_v0  ;;  %1173 = vmatprep.mubr.msk.f32.mxu1 %vm1612_vm0, %v1613_v1  ;;  %v1198_v5 = vpack.c.bf16 %v394_v3, %v393_v2  ;;  %v1201_v7 = vpack.c.bf16 %v396_v6, %v395_v4  ;;  %v392_v8 = vld [vmem:[%s325_s29] sm:$0xff]  ;;  %v480_v9 = vld [vmem:[#allocation10] sm:$0xff]  ;;  %v1118_v13 = vld [vmem:[#allocation8] ss:$0 sm:$0xff]  ;;  %s1616_s15 = smov 96   ;;  %vm484_vm2 = vcmask 130048  }
  0xb1   : > { %v481_v10 = vld [vmem:[#allocation10 + $0x8] sm:$0xff]  ;;  %v483_v25 = vand.u32 127, %v482_v24  ;;  %v489_v26 = vshrl.u32 %v482_v24, 7  ;;  %s1115_s13 = sshll.u32 %s1909_s11, 2  ;;  %vm492_vm3 = vcmask 57344   ;;  %vm570_vm8 = vcmask 64512  }
  0xb2   : > { %1199 = vmatpush3.bf16.msra.mxu0 %v1198_v5  ;;  %v1204_v11 = vpack.c.bf16 %v481_v10, %v480_v9  ;;  %s1956_s23 = scalar_lea.vmem [#allocation12], %s1115_s13  ;;  %s1980_s22 = scalar_lea.vmem [#allocation11], %s1110_s9  ;;  %v572_v42 = vld [vmem:[%s1925_s10] sm:$0xff]  ;;  %v1124_v43 = vld [vmem:[%s1925_s10 + $0x8] sm:$0xff]  ;;  %v1128_v48 = vld [vmem:[%s1925_s10 + $0x10] sm:$0xff] }
  0xb3   : > { %1200 = vmatprep.subr.bf16.mxu0 %v1611_v0  ;;  %v490_v27 = vsub.s32 %v483_v25, %v489_v26  ;;  %v1132_v49 = vld [vmem:[%s1925_s10 + $0x18] sm:$0xff]  ;;  %s887_s2 = sshll.u32 %s1980_s22, 4  ;;  %s1137_s17 = sshll.u32 %s1684_s28, 6  ;;  %s1996_s2 = int_to_ptr.vmem [resolvable:$true] %s887_s2 }
  0xb4   : > { %1205 = vmatpush3.bf16.msra.mxu1 %v1204_v11  ;;  %s903_s16 = sshll.u32 %s1956_s23, 4  ;;  %s2003_s9 = scalar_lea.hbm %s2118_s6, %s1137_s17  ;;  %s904_s16 = int_to_ptr.vmem [resolvable:$true] %s903_s16 }
  0xb5   : > { %1206 = vmatprep.subr.bf16.mxu1 %v1611_v0  ;;  %s2007_s18 = scalar_lea.sflag [#allocation13], %s330_s0  ;;  %s1463_s10 = scalar_lea.vmem %s904_s16, 64 }
  0xb6   : > { %1202 = vmatpush3.bf16.msra.mxu0 %v1201_v7  ;;  %p1464_p2 = scmp.ne.s32.totalorder %s904_s16, %s1463_s10 }
  0xb7   : > { %1209 = vmatprep.subr.bf16.mxu0 %v1611_v0 }
  0xb8   : > { %p1465_p4 = pnand %p1464_p2, %p1817_p5 }
  0xb9   : > { %1167 = vmatmul.mubr.msk.f32.vlgmr.msra.gmra.mrb[0].mxu0 %vm397_vm1, %v392_v8 }
  0xba   : > { %1187 = vmatprep.mubr.msk.f32.mxu0 %vm1612_vm0, %v1613_v1  ;;  %1211 = vmatpush3.bf16.msra.mxu0 %v1204_v11  ;;  %p1466_p0 = pneg %p1465_p4 }
 0x18c   : > { %v467_v12 = vpop.f32.mrb[0].mxu0 }
 0x18d   : > { %v472_v14 = vmul.f32 2.0, %v467_v12  ;;  %v1168_v15 = vpop.f32.mrb[1].mxu0 }
 0x18f   : > { %v479_v16 = vsub.f32 %v1118_v13, %v472_v14 }
 0x191   : > { %765 = vrot.lane.b32.xlu1 %v479_v16, %s1614_s30  ;;  %577 = vrot.lane.b32.xlu0 %v479_v16, %s1615_s8  ;;  %v485_v17 = vsel %vm484_vm2, %v479_v16, inf  ;;  %s1617_s30 = smov [#allocation12]  }
 0x192   : > { %s1467_s8 = sshll.u32 %s1617_s30, 4  ;;  %s1468_s8 = int_to_ptr.vmem [resolvable:$false] %s1467_s8 }
 0x193   : > { %p1470_p8 = scmp.lt.s32.totalorder %s904_s16, %s1468_s8 }
 0x195   : > { %671 = vrot.lane.b32.xlu0 %v479_v16, %s1616_s15  ;;  %s1469_s15 = scalar_lea.vmem %s1468_s8, 128 }
 0x196   : > { %p1471_p6 = scmp.lt.s32.totalorder %s1469_s15, %s1463_s10 }
 0x198   : > { %p1472_p10 = por %p1471_p6, %p1470_p8 }
 0x19a   : > { %p1473_p3 = pnand %p1472_p10, %p1466_p0 }
 0x1b5   : > { %486 = vmin.index.xlane.f32.xlu1 %v485_v17 }
 0x203   : > { %v766_v18 = vpop.permute.xlu1 %765  ;;  %v578_v19 = vpop.permute.xlu0 %577 }
 0x204   : > { %v580_v20 = vsel %vm484_vm2, %v578_v19, inf  ;;  %v768_v21 = vsel %vm484_vm2, %v766_v18, inf }
 0x205   : > { %581 = vmin.index.xlane.f32.xlu0 %v580_v20  ;;  %769 = vmin.index.xlane.f32.xlu1 %v768_v21 }
 0x207   : > { %v672_v22 = vpop.permute.xlu0 %671 }
 0x208   : > { %v674_v23 = vsel %vm484_vm2, %v672_v22, inf }
 0x209   : > { %675 = vmin.index.xlane.f32.xlu0 %v674_v23 }
 0x242   : > { %v487_v28 = vpop.xlane.xlu1 %486 }
 0x243   : > { %v491_v29 = vrot.slane %v487_v28, %v490_v27  ;;  %vm494_vm4 = vcmp.eq.s32.totalorder %v487_v28, %v483_v25 }
 0x244   : > { %v1119_v30 = vsel %vm494_vm4, 1.0, %v1613_v1 }
 0x245   : > { %493 = vst.msk [vmem:[%s1956_s23] sm:$0x1] %vm492_vm3, %v491_v29  ;;  %1174 = vmatmul.mubr.msk.f32.vlgmr.msra.gmra.mrb[0].mxu1 %vm484_vm2, %v1119_v30 }
 0x246   : > { %1208 = vmatpush3.bf16.msra.mxu1 %v1204_v11  ;;  %1180 = vmatprep.mubr.msk.f32.mxu1 %vm1612_vm0, %v1613_v1 }
 0x247   : > { %1212 = vmatprep.subr.bf16.mxu1 %v1611_v0 }
 0x292   : > { %v582_v31 = vpop.xlane.xlu0 %581  ;;  %v770_v32 = vpop.xlane.xlu1 %769 }
 0x293   : > { %v586_v33 = vrot.slane %v582_v31, %v490_v27  ;;  %vm588_vm5 = vcmp.eq.s32.totalorder %v582_v31, %v483_v25  ;;  %v774_v34 = vrot.slane %v770_v32, %v490_v27  ;;  %vm776_vm6 = vcmp.eq.s32.totalorder %v770_v32, %v483_v25 }
 0x294   : > { %v1121_v35 = vsel %vm588_vm5, 1.0, %v1613_v1  ;;  %v1129_v38 = vsel %vm776_vm6, 1.0, %v1613_v1 }
 0x295   : > { %587 = vst.msk [vmem:[%s1956_s23 + $0x1] sm:$0x1] %vm492_vm3, %v586_v33  ;;  %775 = vst.msk [vmem:[%s1956_s23 + $0x3] sm:$0x1] %vm492_vm3, %v774_v34  ;;  %1181 = vmatmul.mubr.msk.f32.vlgmr.msra.gmra.mrb[2].mxu1 %vm484_vm2, %v1121_v35 }
 0x296   : > { %v676_v36 = vpop.xlane.xlu0 %675  ;;  %1214 = vmatpush3.bf16.msra.mxu1 %v1204_v11  ;;  %1194 = vmatprep.mubr.msk.f32.mxu1 %vm1612_vm0, %v1613_v1 }
 0x297   : > { %v680_v37 = vrot.slane %v676_v36, %v490_v27  ;;  %vm682_vm7 = vcmp.eq.s32.totalorder %v676_v36, %v483_v25 }
 0x298   : > { %v1125_v39 = vsel %vm682_vm7, 1.0, %v1613_v1 }
 0x299   : > { %681 = vst.msk [vmem:[%s1956_s23 + $0x2] sm:$0x1] %vm492_vm3, %v680_v37  ;;  %1188 = vmatmul.mubr.msk.f32.vlgmr.msra.gmra.mrb[2].mxu0 %vm484_vm2, %v1125_v39  ;;  %1195 = vmatmul.mubr.msk.f32.vlgmr.msra.gmra.mrb[4].mxu1 %vm484_vm2, %v1129_v38 }
 0x318   : > { %v566_v40 = vpop.f32.mrb[0].mxu1 }
 0x319   : > { %571 = vst.msk [vmem:[%s1980_s22] sm:$0xff] %vm570_vm8, %v566_v40  ;;  %v1175_v41 = vpop.f32.mrb[1].mxu1  ;;  %v573_v44 = vsub.f32 %v566_v40, %v572_v42 }
 0x31b   : > { %v574_v50 = vmul.f32 %v573_v44, %v573_v44 }
 0x368   : > { %v660_v45 = vpop.f32.mrb[2].mxu1 }
 0x369   : > { %1123 = vst.msk [vmem:[%s1980_s22 + $0x8] sm:$0xff] %vm570_vm8, %v660_v45  ;;  %v668_v46 = vsub.f32 %v660_v45, %v1124_v43  ;;  %v1182_v47 = vpop.f32.mrb[3].mxu1 }
 0x36b   : > { %v669_v51 = vmul.f32 %v668_v46, %v668_v46 }
 0x36c   : > { %v754_v52 = vpop.f32.mrb[2].mxu0  ;;  %v848_v53 = vpop.f32.mrb[4].mxu1 }
 0x36d   : > { %v670_v54 = vadd.f32 %v669_v51, %v574_v50  ;;  %1127 = vst.msk [vmem:[%s1980_s22 + $0x10] sm:$0xff] %vm570_vm8, %v754_v52  ;;  %v762_v55 = vsub.f32 %v754_v52, %v1128_v48  ;;  %1131 = vst.msk [vmem:[%s1980_s22 + $0x18] sm:$0xff] %vm570_vm8, %v848_v53  ;;  %v856_v56 = vsub.f32 %v848_v53, %v1132_v49  ;;  %v1189_v57 = vpop.f32.mrb[3].mxu0  ;;  %v1196_v58 = vpop.f32.mrb[5].mxu1 }
 0x36f   : > { %v763_v59 = vmul.f32 %v762_v55, %v762_v55  ;;  %v857_v61 = vmul.f32 %v856_v56, %v856_v56 }
 0x371   : > { %v764_v60 = vadd.f32 %v763_v59, %v670_v54 }
 0x373   : > { %v858_v62 = vadd.f32 %v857_v61, %v764_v60 }
 0x375   : > { %v859_v63 = vsel %vm570_vm8, %v858_v62, 0.0 }
 0x376   : > { %860 = vadd.xlane.f32.xlu0 %v859_v63 }
 0x377   : > { %1476 = shalt.err (!%p1473_p3)
}
 0x378   : > { %s1477_s0 = scalar_lea.hbm %s2003_s9, 64  ;;  %s1481_s22 = scalar_lea.hbm %s2118_s6, 128 }
 0x379   : > { %p1478_p9 = scmp.ne.s32.totalorder %s2003_s9, %s1477_s0  ;;  %p1482_p7 = scmp.lt.u32.totalorder %s2003_s9, %s2118_s6 }
 0x37a   : > { %p1483_p12 = scmp.lt.u32.totalorder %s1481_s22, %s1477_s0  ;;  %p1485_p2 = scmp.lt.u32.totalorder %s1477_s0, %s2003_s9 }
 0x37b   : > { %p1479_p13 = pnand %p1478_p9, %p1817_p5 }
 0x37c   : > { %p1484_p1 = por %p1483_p12, %p1482_p7 }
 0x37d   : > { %p1480_p11 = pneg %p1479_p13 }
 0x37e   : > { %p1486_p4 = por %p1485_p2, %p1484_p1 }
 0x380   : > { %p1487_p0 = pnand %p1486_p4, %p1480_p11 }
 0x382   : > { %1490 = shalt.err (!%p1487_p0)
}
 0x383   : > { %1232 = dma.vmem_to_hbm [thread:$0]  (%p1817_p5), %s904_s16, 64, %s2003_s9, %s2007_s18  }
 0x384   : > { %s1136_s29 = sshll.u32 %s1684_s28, 7  ;;  %s865_s15 = scalar_lea.sflag [#allocation4], %s1909_s11 }
 0x385   : > { %s2033_s8 = scalar_lea.hbm %s2117_s5, %s1136_s29  ;;  %s1491_s0 = scalar_lea.vmem %s1996_s2, 512 }
 0x386   : > { %p1492_p8 = scmp.ne.s32.totalorder %s1996_s2, %s1491_s0  ;;  %s1618_s13 = smov [#allocation11]  }
 0x387   : > { %s1495_s23 = sshll.u32 %s1618_s13, 4  ;;  %s1496_s23 = int_to_ptr.vmem [resolvable:$false] %s1495_s23 }
 0x388   : > { %p1493_p6 = pnand %p1492_p8, %p1817_p5  ;;  %s1497_s22 = scalar_lea.vmem %s1496_s23, 1024 }
 0x389   : > { %p1498_p3 = scmp.lt.s32.totalorder %s1996_s2, %s1496_s23  ;;  %p1499_p9 = scmp.lt.s32.totalorder %s1497_s22, %s1491_s0 }
 0x38a   : > { %p1494_p10 = pneg %p1493_p6 }
 0x38b   : > { %p1500_p13 = por %p1499_p9, %p1498_p3 }
 0x38d   : > { %p1501_p11 = pnand %p1500_p13, %p1494_p10 }
 0x38f   : > { %1504 = shalt.err (!%p1501_p11)
}
 0x390   : > { %s1505_s16 = scalar_lea.hbm %s2033_s8, 512  ;;  %s1509_s14 = scalar_lea.hbm %s2117_s5, 1024 }
 0x391   : > { %p1506_p7 = scmp.ne.s32.totalorder %s2033_s8, %s1505_s16  ;;  %p1510_p2 = scmp.lt.u32.totalorder %s2033_s8, %s2117_s5 }
 0x392   : > { %p1511_p4 = scmp.lt.u32.totalorder %s1509_s14, %s1505_s16  ;;  %p1513_p8 = scmp.lt.u32.totalorder %s1505_s16, %s2033_s8 }
 0x393   : > { %p1507_p12 = pnand %p1506_p7, %p1817_p5 }
 0x394   : > { %p1512_p0 = por %p1511_p4, %p1510_p2 }
 0x395   : > { %p1508_p1 = pneg %p1507_p12 }
 0x396   : > { %p1514_p6 = por %p1513_p8, %p1512_p0 }
 0x398   : > { %p1515_p10 = pnand %p1514_p6, %p1508_p1 }
 0x39a   : > { %1518 = shalt.err (!%p1515_p10)
}
 0x39b   : > { %s1619_s0 = smov 128   ;;  %s1620_s13 = smov 256   ;;  %vm862_vm9 = vcmask 7168  }
 0x39c   : > { %s1621_s23 = smov 8   ;;  %s391_s22 = scalar_lea.vmem [#allocation14], %s1109_s21 }
 0x39d   : > { %1231 = dma.vmem_to_hbm [thread:$0]  (%p1817_p5), %s1996_s2, 512, %s2033_s8, %s865_s15, %s1619_s0, %s1620_s13, %s1621_s23  }
 0x39e   : > { %s916_s9 = sshll.u32 %s391_s22, 4  ;;  %s2066_s14 = scalar_lea.hbm %s2119_s7, %s1136_s29  ;;  %s2068_s9 = int_to_ptr.vmem [resolvable:$true] %s916_s9 }
 0x39f   : > { %s1519_s10 = scalar_lea.vmem %s2068_s9, 128  ;;  %s1622_s11 = smov [#allocation14]  }
 0x3a0   : > { %p1520_p3 = scmp.ne.s32.totalorder %s2068_s9, %s1519_s10  ;;  %s1523_s21 = sshll.u32 %s1622_s11, 4  ;;  %s1524_s21 = int_to_ptr.vmem [resolvable:$false] %s1523_s21 }
 0x3a1   : > { %s1525_s28 = scalar_lea.vmem %s1524_s21, 256  ;;  %p1526_p11 = scmp.lt.s32.totalorder %s2068_s9, %s1524_s21 }
 0x3a2   : > { %p1521_p9 = pnand %p1520_p3, %p1817_p5  ;;  %p1527_p7 = scmp.lt.s32.totalorder %s1525_s28, %s1519_s10 }
 0x3a4   : > { %p1522_p13 = pneg %p1521_p9  ;;  %p1528_p12 = por %p1527_p7, %p1526_p11 }
 0x3a6   : > { %p1529_p1 = pnand %p1528_p12, %p1522_p13 }
 0x403   : > { %v861_v0 = vpop.xlane.xlu0 %860 }
 0x404   : > { %863 = vst.msk [vmem:[%s391_s22] sm:$0xff] %vm862_vm9, %v861_v0 }
 0x405   : > { %1532 = shalt.err (!%p1529_p1)
}
 0x406   : > { %s1533_s2 = scalar_lea.hbm %s2066_s14, 128  ;;  %s1537_s15 = scalar_lea.hbm %s2119_s7, 256 }
 0x407   : > { %p1534_p2 = scmp.ne.s32.totalorder %s2066_s14, %s1533_s2  ;;  %p1538_p8 = scmp.lt.u32.totalorder %s2066_s14, %s2119_s7 }
 0x408   : > { %p1539_p6 = scmp.lt.u32.totalorder %s1537_s15, %s1533_s2  ;;  %p1541_p3 = scmp.lt.u32.totalorder %s1533_s2, %s2066_s14 }
 0x409   : > { %p1535_p4 = pnand %p1534_p2, %p1817_p5 }
 0x40a   : > { %p1540_p10 = por %p1539_p6, %p1538_p8 }
 0x40b   : > { %p1536_p0 = pneg %p1535_p4 }
 0x40c   : > { %p1542_p9 = por %p1541_p3, %p1540_p10 }
 0x40e   : > { %p1543_p13 = pnand %p1542_p9, %p1536_p0 }
 0x410   : > { %1546 = shalt.err (!%p1543_p13)
}
 0x411   : > { %1233 = dma.vmem_to_hbm [thread:$0]  (%p1817_p5), %s2068_s9, 128, %s2066_s14, %s2007_s18  }
 0x412 PF: > { %s2149_s13 = sld [smem:[#allocation21_spill]]  ;;  %s928_s23 = sand.u32 1, %s1589_s24  }
 0x413   : > { %p2151_p7 = scmp.ge.s32.totalorder %s1601_s27, 2  ;;  %s929_s22 = scalar_lea.sflag [#allocation4], %s928_s23 }
 0x418   : > { %p2150_p11 = scmp.ne.s32.totalorder %s2149_s13, 0 }
 0x41a   : > { %p1255_p12 = pnand %p2151_p7, %p2150_p11 }
 0x41c   : > { %1580 = dma.done.wait (!%p1255_p12), %s929_s22, 512  }
 0x41d   : > { %1582 = vsyncadd (!%p1255_p12), %s929_s22, 4294966784  ;;  %s2152_s16 = sadd.s32 4294967294, %s1601_s27  }
 0x41e   : > { %s937_s17 = sand.u32 1, %s2152_s16  }
 0x41f   : > { %s938_s10 = scalar_lea.sflag [#allocation13], %s937_s17 }
 0x420   : > { %1584 = dma.done.wait (!%p1255_p12), %s938_s10, 192  }
 0x421   : > { %1586 = vsyncadd (!%p1255_p12), %s938_s10, 4294967104  ;;  %p28_p5 = scmp.ge.s32.totalorder %s1803_s12, 4   ;;  %s2153_s24 = smov %s1593_s25 }
 0x422   : > { %s2154_s25 = smov %s1597_s26  ;;  %s2155_s26 = smov %s1813_s19 }
 0x423   : > { %s2156_s27 = smov %s1803_s12  ;;  %30 = sbr.rel (!%p28_p5) target bundleno = 13 (0xd), region = 148 }
 0x42a   :  { %952 = vsyncpa [#allocation3], 1 }
 0x42b   :  { %954 = vsyncpa [#allocation3 + $0x1], 1 }
 0x42c   :  { %955 = vsyncpa [#allocation6], 1 }
 0x42d   :  { %957 = vsyncpa [#allocation6 + $0x1], 1 }
 0x42e   :  { %958 = vsyncpa [#allocation9], 1 }
 0x42f   :  { %959 = vsyncpa [#allocation4], 1 }
 0x430   :  { %961 = vsyncpa [#allocation4 + $0x1], 1 }
 0x431   :  { %962 = vsyncpa [#allocation13], 1 }
 0x432   :  { %964 = vsyncpa [#allocation13 + $0x1], 1 }

</bundles_post_ra>
